<compile_context>
chip_gen: v5e
topology: v5e:2x2
jax: 0.10.0
libtpu: 0.0.40
codegen_flags: <defaults>
</compile_context>

<pallas_src>
import functools

import jax
import jax.numpy as jnp
from jax.experimental import pallas as pl
from jax.experimental.pallas import tpu as pltpu


def _round_up(n, m):
    return ((n + m - 1) // m) * m


# ------------------------------- fused kernel --------------------------------

def _gdcnp_kernel(*refs, n_cross, n_mlp, d_in, d_gate, fuse_first, matmul_dtype):
    """One batch tile of the full GDCNP forward.

    Ref order (inputs then output):
      x [TB, D] f32
      (fuse_first) w0_fused [D, 2*Dg + H1]
      (if any)     cross_wc_rest [Lr, D, 2*Dg]   (W in lanes [0,D), Wg in [Dg,Dg+D))
      cross_b [L, 1, D]
      mlp_w (n_mlp - fuse_first refs) [in, H]     (BN(eval) folded in)
      mlp_b (n_mlp refs)              [1, H]
      fc_w_cn [1, D], fc_w_mlp [1, H_last], fc_b [1, 1]
      o [1, TB]  (lane-dense output row)
    """
    idx = 0
    x_ref = refs[idx]; idx += 1
    w0f_ref = None
    if fuse_first:
        w0f_ref = refs[idx]; idx += 1
    n_cross_rest = n_cross - 1 if fuse_first else n_cross
    cwc_ref = None
    if n_cross_rest > 0:
        cwc_ref = refs[idx]; idx += 1
    cb_ref = refs[idx]; idx += 1
    n_mlp_rest = n_mlp - 1 if fuse_first else n_mlp
    mlp_w_refs = refs[idx:idx + n_mlp_rest]; idx += n_mlp_rest
    mlp_b_refs = refs[idx:idx + n_mlp]; idx += n_mlp
    fc_wcn_ref = refs[idx]
    fc_wmlp_ref = refs[idx + 1]
    fc_b_ref = refs[idx + 2]
    o_ref = refs[idx + 3]

    D, Dg = d_in, d_gate
    x0 = x_ref[...]                                   # [TB, D] f32

    if fuse_first:
        # one matmul feeds cross layer 0 (W|Wg) AND MLP layer 0 (both read x0)
        y0 = jnp.dot(x0.astype(matmul_dtype), w0f_ref[...],
                     preferred_element_type=jnp.float32)      # [TB, 2Dg+H1]
        xw = y0[:, :D]                                 # lane offset 0
        xg = jax.nn.sigmoid(y0[:, Dg:Dg + D])          # lane offset Dg (128-aligned)
        x = x0 * (xw + cb_ref[0]) * xg + x0
        h = jnp.maximum(y0[:, 2 * Dg:] + mlp_b_refs[0][...], 0.0)
        c0, m0 = 1, 1
    else:
        x, h = x0, x0
        c0, m0 = 0, 0

    # ---- remaining gated cross layers (intermediates stay in vregs/VMEM) ----
    for i in range(c0, n_cross):
        xw_xg = jnp.dot(x.astype(matmul_dtype), cwc_ref[i - c0],
                        preferred_element_type=jnp.float32)   # [TB, 2Dg]
        xw = xw_xg[:, :D]
        xg = jax.nn.sigmoid(xw_xg[:, Dg:Dg + D])       # EUP
        x = x0 * (xw + cb_ref[i]) * xg + x             # VPU, f32 elementwise
    cross_cn = x

    # ---- remaining MLP layers: Linear -> BN(eval, folded) -> ReLU ------------
    for li in range(m0, n_mlp):
        y = jnp.dot(h.astype(matmul_dtype), mlp_w_refs[li - m0][...],
                    preferred_element_type=jnp.float32)
        h = jnp.maximum(y + mlp_b_refs[li][...], 0.0)

    # ---- fc(concat([cross_cn, h])) as VPU multiply + cross-lane reduce -------
    r = (jnp.sum(cross_cn * fc_wcn_ref[...], axis=-1)
         + jnp.sum(h * fc_wmlp_ref[...], axis=-1))            # [TB]
    # lane-dense store: [1, TB] row (transpose handled by XLU; its slot is free)
    o_ref[...] = r[None, :] + fc_b_ref[...]


# --------------------------------- wrapper ------------------------------------

def _choose_tiling(B, batch_tile):
    """Pick (TB, Bp).  Small batches run as one full-array step; larger batches
    use lane-dense 128-multiple tiles with >= 2 grid steps so v7x's two
    TensorCores both get work via the "parallel" batch axis."""
    b_full = _round_up(B, 8)
    if b_full < 256:
        return b_full, b_full
    tb = min(batch_tile, -(-b_full // 2))         # at least 2 tiles
    tb = max(128, (tb // 128) * 128)              # lane-dense multiple of 128
    return tb, _round_up(B, tb)


def gdcnp_pallas(x_emb, pp, *, batch_tile=1024):
    """Fused GDCNP forward. x_emb: [B, D] f32; pp: prepared (folded) params."""
    B, D = x_emb.shape
    meta = pp["meta"]
    L, n_mlp = meta["n_cross"], meta["n_mlp"]
    Dg = meta["d_gate"]
    fuse_first = meta["fuse_first"]
    matmul_dtype = meta["matmul_dtype"]

    TB, Bp = _choose_tiling(B, batch_tile)
    if Bp != B:
        x_emb = jnp.pad(x_emb, ((0, Bp - B), (0, 0)))
    grid = (Bp // TB,)

    def _const(ndim):
        return lambda i: (0,) * ndim

    in_specs = [pl.BlockSpec((TB, D), lambda i: (i, 0))]
    flat_args = [x_emb]

    def _add_const(arr):
        # grid-constant operand: full array, index map never changes, so the
        # pipeline fetches it once and it stays VMEM-resident across the grid.
        in_specs.append(pl.BlockSpec(arr.shape, _const(arr.ndim)))
        flat_args.append(arr)

    if fuse_first:
        _add_const(pp["w0_fused"])
    if pp["cross_wc"] is not None:
        _add_const(pp["cross_wc"])
    _add_const(pp["cross_b"])
    for w in pp["mlp_w"]:
        _add_const(w)
    for b in pp["mlp_b"]:
        _add_const(b)
    _add_const(pp["fc_w_cn"])
    _add_const(pp["fc_w_mlp"])
    _add_const(pp["fc_b"])

    kern = functools.partial(_gdcnp_kernel, n_cross=L, n_mlp=n_mlp, d_in=D,
                             d_gate=Dg, fuse_first=fuse_first,
                             matmul_dtype=matmul_dtype)

    # advisory cost estimate so XLA schedules the custom call sensibly
    h_dims = [D] + [int(b.shape[1]) for b in pp["mlp_b"]]
    mm_flops_row = (2 * D * (2 * Dg) * L
                    + 2 * sum(a * b for a, b in zip(h_dims[:-1], h_dims[1:])))
    ew_flops_row = L * 6 * D + 2 * sum(h_dims[1:]) + 2 * (D + h_dims[-1])
    weight_bytes = sum(int(a.size) * a.dtype.itemsize for a in flat_args[1:])
    bytes_accessed = (int(x_emb.size) * x_emb.dtype.itemsize
                      + weight_bytes + Bp * 4)
    cost = pl.CostEstimate(flops=int(Bp * (mm_flops_row + ew_flops_row)),
                           transcendentals=int(Bp * L * D),
                           bytes_accessed=int(bytes_accessed))

    # only raise the scoped-VMEM limit when the footprint actually needs it
    x_tile_bytes = TB * D * x_emb.dtype.itemsize
    live_bytes = TB * (D + 2 * Dg + max(h_dims)) * 4 * 3   # rough working set
    est_vmem = 2 * (x_tile_bytes + TB * 4) + 2 * weight_bytes + live_bytes
    vmem_limit = int(min(2 * est_vmem, 60 << 20)) if est_vmem > (32 << 20) else None

    out = pl.pallas_call(
        kern,
        grid=grid,
        in_specs=in_specs,
        out_specs=pl.BlockSpec((1, TB), lambda i: (0, i)),
        out_shape=jax.ShapeDtypeStruct((1, Bp), jnp.float32),
        compiler_params=pltpu.CompilerParams(
            dimension_semantics=("parallel",),
            vmem_limit_bytes=vmem_limit),
        cost_estimate=cost,
    )(*flat_args)
    return out[0, :B][:, None]


def gdcnp_forward(x_idx, raw_params, pallas_params, *, batch_tile=1024):
    # Embedding lookup (plain JAX glue): shared table with per-field offsets.
    emb = raw_params["table"][x_idx + raw_params["offsets"][None, :]]   # [B, F, E]
    x_emb = emb.reshape(x_idx.shape[0], -1).astype(jnp.float32)         # [B, D]
    return gdcnp_pallas(x_emb, pallas_params, batch_tile=batch_tile)


# --------------------------- pure-JAX reference -------------------------------

def gdcnp_reference(x_idx, params):
    emb = params["table"][x_idx + params["offsets"][None, :]]
    x_emb = emb.reshape(x_idx.shape[0], -1).astype(jnp.float32)

    x0 = x_emb
    x = x_emb
    for i in range(params["cross_w"].shape[0]):
        xw = x @ params["cross_w"][i]
        xg = jax.nn.sigmoid(x @ params["cross_wg"][i])
        x = x0 * (xw + params["cross_b"][i][None, :]) * xg + x
    cross_cn = x

    h = x_emb
    for (w, b, scale, shift) in params["mlp"]:
        h = jnp.maximum((h @ w + b) * scale + shift, 0.0)

    return cross_cn @ params["fc_w_cn"] + h @ params["fc_w_mlp"] + params["fc_b"]


# ------------------------------ param handling --------------------------------

def init_params(key, field_dims, embed_dim, cn_layers, mlp_layers):
    num_fields = len(field_dims)
    D = num_fields * embed_dim
    vocab = int(sum(field_dims))
    keys = jax.random.split(key, 16)

    offsets = jnp.asarray([0] + list(jnp.cumsum(jnp.asarray(field_dims))[:-1]),
                          dtype=jnp.int32)
    table = 0.1 * jax.random.normal(keys[0], (vocab, embed_dim), jnp.float32)

    k = 1.0 / jnp.sqrt(jnp.float32(D))
    cross_w = jax.random.uniform(keys[1], (cn_layers, D, D), jnp.float32, -k, k)
    cross_wg = jax.random.uniform(keys[2], (cn_layers, D, D), jnp.float32, -k, k)
    cross_b = jax.random.uniform(keys[3], (cn_layers, D), jnp.float32, 0.0, 1.0)

    mlp = []
    in_dim = D
    eps = 1e-5
    for li, h in enumerate(mlp_layers):
        kk = 1.0 / jnp.sqrt(jnp.float32(in_dim))
        w = jax.random.uniform(keys[4 + 2 * li], (in_dim, h), jnp.float32, -kk, kk)
        b = jax.random.uniform(keys[5 + 2 * li], (1, h), jnp.float32, -kk, kk)
        gamma = jnp.ones((1, h), jnp.float32)
        beta = jnp.zeros((1, h), jnp.float32)
        run_mean = jnp.zeros((1, h), jnp.float32)
        run_var = jnp.ones((1, h), jnp.float32)
        scale = gamma / jnp.sqrt(run_var + eps)       # BN(eval) scale
        shift = beta - run_mean * scale
        mlp.append((w, b, scale, shift))
        in_dim = h

    fc_in = D + mlp_layers[-1]
    kf = 1.0 / jnp.sqrt(jnp.float32(fc_in))
    fc_w = jax.random.uniform(keys[12], (fc_in, 1), jnp.float32, -kf, kf)
    fc_b = jax.random.uniform(keys[13], (1, 1), jnp.float32, -kf, kf)

    return {
        "offsets": offsets,
        "table": table,
        "cross_w": cross_w,
        "cross_wg": cross_wg,
        "cross_b": cross_b,
        "mlp": mlp,
        "fc_w_cn": fc_w[:D, :],     # [D, 1]
        "fc_w_mlp": fc_w[D:, :],    # [H, 1]
        "fc_b": fc_b,
    }


def prepare_pallas_params(params, matmul_dtype=jnp.float32,
                          pad_gate_split=True, fuse_first=True):
    """Fold BN into the MLP, merge+align cross W/Wg, fuse the two layer-0
    matmuls, lay fc weights out lane-dense.

    matmul_dtype=jnp.bfloat16 halves weight DMA/VMEM bytes and uses the bf16
    MXU path (f32 accumulation is kept via preferred_element_type).
    pad_gate_split=True puts Wg on a 128-lane tile boundary (free on v6e/v7x;
    set False on v5e if its 128-wide MXU becomes the limiter).
    """
    cross_w, cross_wg = params["cross_w"], params["cross_wg"]
    L, D, _ = cross_w.shape
    Dg = _round_up(D, 128) if pad_gate_split else D
    wc = jnp.zeros((L, D, 2 * Dg), jnp.float32)
    wc = wc.at[:, :, :D].set(cross_w)            # W  in lanes [0, D)
    wc = wc.at[:, :, Dg:Dg + D].set(cross_wg)    # Wg in lanes [Dg, Dg+D) only
    wc = wc.astype(matmul_dtype)
    cross_b = params["cross_b"][:, None, :]      # [L, 1, D]

    mlp_w, mlp_b = [], []
    for (w, b, scale, shift) in params["mlp"]:
        mlp_w.append((w * scale).astype(matmul_dtype))   # BN(eval) folded
        mlp_b.append(b * scale + shift)
    n_mlp = len(mlp_w)

    fuse_first = bool(fuse_first) and L >= 1 and n_mlp >= 1
    if fuse_first:
        w0_fused = jnp.concatenate([wc[0], mlp_w[0]], axis=-1)  # [D, 2Dg+H1]
        cross_wc_rest = wc[1:] if L > 1 else None
        mlp_w_rest = mlp_w[1:]
    else:
        w0_fused = None
        cross_wc_rest = wc
        mlp_w_rest = mlp_w

    return {
        "w0_fused": w0_fused,
        "cross_wc": cross_wc_rest,
        "cross_b": cross_b,
        "mlp_w": mlp_w_rest,
        "mlp_b": mlp_b,
        "fc_w_cn": params["fc_w_cn"].T,                  # [1, D]
        "fc_w_mlp": params["fc_w_mlp"].T,                # [1, H]
        "fc_b": params["fc_b"],                          # [1, 1]
        "meta": dict(n_cross=L, n_mlp=n_mlp, d_in=D, d_gate=Dg,
                     fuse_first=fuse_first, matmul_dtype=matmul_dtype),
    }


# ----------------------------------- main --------------------------------------

if __name__ == "__main__":
    field_dims = (10, 20, 30, 15)   # 4 fields
    embed_dim = 8                   # D = 4 * 8 = 32
    cn_layers = 3
    mlp_layers = (64, 64, 64)
    batch = 8

    key = jax.random.PRNGKey(0)
    pkey, xkey = jax.random.split(key)
    params = init_params(pkey, field_dims, embed_dim, cn_layers, mlp_layers)

    # integer feature ids per field, valid range per field
    maxes = jnp.asarray(field_dims, dtype=jnp.int32)[None, :]
    x_idx = (jax.random.randint(xkey, (batch, len(field_dims)), 0, 1 << 20,
                                dtype=jnp.int32) % maxes).astype(jnp.int32)

    ref = gdcnp_reference(x_idx, params)

    # f32 weight path (tight check)
    pp_f32 = prepare_pallas_params(params, matmul_dtype=jnp.float32)
    out_f32 = jax.block_until_ready(gdcnp_forward(x_idx, params, pp_f32))
    assert out_f32.shape == (batch, 1), out_f32.shape
    assert jnp.allclose(out_f32, ref, rtol=5e-3, atol=5e-3), (out_f32, ref)

    # bf16 weight path (production default; f32 accumulation, looser check)
    pp_bf16 = prepare_pallas_params(params, matmul_dtype=jnp.bfloat16)
    out_bf16 = jax.block_until_ready(gdcnp_forward(x_idx, params, pp_bf16))
    assert out_bf16.shape == (batch, 1), out_bf16.shape
    assert jnp.allclose(out_bf16, ref, rtol=5e-2, atol=5e-2), (out_bf16, ref)

    print("KERNEL_OK")
</pallas_src>

<mosaic_0001>
module attributes {stable_mosaic.version = 11 : i64} {
  func.func @_gdcnp_kernel(%arg0: i32, %arg1: memref<8x32xf32, #tpu.memory_space<vmem>>, %arg2: memref<32x320xf32, #tpu.memory_space<vmem>>, %arg3: memref<2x32x256xf32, #tpu.memory_space<vmem>>, %arg4: memref<3x1x32xf32, #tpu.memory_space<vmem>>, %arg5: memref<64x64xf32, #tpu.memory_space<vmem>>, %arg6: memref<64x64xf32, #tpu.memory_space<vmem>>, %arg7: memref<1x64xf32, #tpu.memory_space<vmem>>, %arg8: memref<1x64xf32, #tpu.memory_space<vmem>>, %arg9: memref<1x64xf32, #tpu.memory_space<vmem>>, %arg10: memref<1x32xf32, #tpu.memory_space<vmem>>, %arg11: memref<1x64xf32, #tpu.memory_space<vmem>>, %arg12: memref<1x1xf32, #tpu.memory_space<vmem>>, %arg13: memref<1x8xf32, #tpu.memory_space<vmem>>) attributes {dimension_semantics = [#tpu.dimension_semantics<parallel>], iteration_bounds = array<i64: 1>, scalar_prefetch = 0 : i64, scratch_operands = 0 : i64, tpu.core_type = #tpu.core_type<tc>, window_params = [{transform_indices = @transform_0, window_bounds = array<i64: 8, 32>}, {pipeline_mode = #tpu.pipeline_mode<synchronous>, transform_indices = @transform_1, window_bounds = array<i64: 32, 320>}, {pipeline_mode = #tpu.pipeline_mode<synchronous>, transform_indices = @transform_2, window_bounds = array<i64: 2, 32, 256>}, {pipeline_mode = #tpu.pipeline_mode<synchronous>, transform_indices = @transform_3, window_bounds = array<i64: 3, 1, 32>}, {pipeline_mode = #tpu.pipeline_mode<synchronous>, transform_indices = @transform_4, window_bounds = array<i64: 64, 64>}, {pipeline_mode = #tpu.pipeline_mode<synchronous>, transform_indices = @transform_5, window_bounds = array<i64: 64, 64>}, {pipeline_mode = #tpu.pipeline_mode<synchronous>, transform_indices = @transform_6, window_bounds = array<i64: 1, 64>}, {pipeline_mode = #tpu.pipeline_mode<synchronous>, transform_indices = @transform_7, window_bounds = array<i64: 1, 64>}, {pipeline_mode = #tpu.pipeline_mode<synchronous>, transform_indices = @transform_8, window_bounds = array<i64: 1, 64>}, {pipeline_mode = #tpu.pipeline_mode<synchronous>, transform_indices = @transform_9, window_bounds = array<i64: 1, 32>}, {pipeline_mode = #tpu.pipeline_mode<synchronous>, transform_indices = @transform_10, window_bounds = array<i64: 1, 64>}, {pipeline_mode = #tpu.pipeline_mode<synchronous>, transform_indices = @transform_11, window_bounds = array<i64: 1, 1>}, {transform_indices = @transform_12, window_bounds = array<i64: 1, 8>}]} {
    %c0 = arith.constant 0 : index
    %c0_0 = arith.constant 0 : index
    %0 = vector.load %arg1[%c0, %c0_0] : memref<8x32xf32, #tpu.memory_space<vmem>>, vector<8x32xf32>
    %c0_1 = arith.constant 0 : index
    %c0_2 = arith.constant 0 : index
    %1 = vector.load %arg2[%c0_1, %c0_2] : memref<32x320xf32, #tpu.memory_space<vmem>>, vector<32x320xf32>
    %cst = arith.constant dense<0.000000e+00> : vector<8x320xf32>
    %2 = tpu.matmul %0, %1, %cst {dimension_numbers = #tpu.dot_dimension_numbers<[1], [0], [0], [1], [0, 0, 1, 1], [], []>} : vector<8x32xf32>, vector<32x320xf32>, vector<8x320xf32> -> vector<8x320xf32>
    %3 = vector.extract_strided_slice %2 {offsets = [0, 0], sizes = [8, 32], strides = [1, 1]} : vector<8x320xf32> to vector<8x32xf32>
    %4 = vector.extract_strided_slice %2 {offsets = [0, 128], sizes = [8, 32], strides = [1, 1]} : vector<8x320xf32> to vector<8x32xf32>
    %5 = arith.negf %4 : vector<8x32xf32>
    %6 = math.exp %5 : vector<8x32xf32>
    %cst_3 = arith.constant 1.000000e+00 : f32
    %7 = vector.broadcast %cst_3 : f32 to vector<8x32xf32>
    %8 = arith.addf %7, %6 : vector<8x32xf32>
    %9 = arith.divf %7, %8 : vector<8x32xf32>
    %c0_4 = arith.constant 0 : index
    %c0_5 = arith.constant 0 : index
    %c0_6 = arith.constant 0 : index
    %10 = vector.load %arg4[%c0_4, %c0_5, %c0_6] : memref<3x1x32xf32, #tpu.memory_space<vmem>>, vector<1x1x32xf32>
    %11 = vector.shape_cast %10 : vector<1x1x32xf32> to vector<1x32xf32>
    %12 = vector.broadcast %11 : vector<1x32xf32> to vector<8x32xf32>
    %13 = arith.addf %3, %12 : vector<8x32xf32>
    %14 = arith.mulf %0, %13 : vector<8x32xf32>
    %15 = arith.mulf %14, %9 : vector<8x32xf32>
    %16 = arith.addf %15, %0 : vector<8x32xf32>
    %17 = vector.extract_strided_slice %2 {offsets = [0, 256], sizes = [8, 64], strides = [1, 1]} : vector<8x320xf32> to vector<8x64xf32>
    %c0_7 = arith.constant 0 : index
    %c0_8 = arith.constant 0 : index
    %18 = vector.load %arg7[%c0_7, %c0_8] : memref<1x64xf32, #tpu.memory_space<vmem>>, vector<1x64xf32>
    %19 = vector.broadcast %18 : vector<1x64xf32> to vector<8x64xf32>
    %20 = arith.addf %17, %19 : vector<8x64xf32>
    %cst_9 = arith.constant 0.000000e+00 : f32
    %21 = vector.broadcast %cst_9 : f32 to vector<8x64xf32>
    %22 = arith.maximumf %20, %21 : vector<8x64xf32>
    %c0_10 = arith.constant 0 : index
    %c0_11 = arith.constant 0 : index
    %c0_12 = arith.constant 0 : index
    %23 = vector.load %arg3[%c0_10, %c0_11, %c0_12] : memref<2x32x256xf32, #tpu.memory_space<vmem>>, vector<1x32x256xf32>
    %24 = vector.shape_cast %23 : vector<1x32x256xf32> to vector<32x256xf32>
    %cst_13 = arith.constant dense<0.000000e+00> : vector<8x256xf32>
    %25 = tpu.matmul %16, %24, %cst_13 {dimension_numbers = #tpu.dot_dimension_numbers<[1], [0], [0], [1], [0, 0, 1, 1], [], []>} : vector<8x32xf32>, vector<32x256xf32>, vector<8x256xf32> -> vector<8x256xf32>
    %26 = vector.extract_strided_slice %25 {offsets = [0, 0], sizes = [8, 32], strides = [1, 1]} : vector<8x256xf32> to vector<8x32xf32>
    %27 = vector.extract_strided_slice %25 {offsets = [0, 128], sizes = [8, 32], strides = [1, 1]} : vector<8x256xf32> to vector<8x32xf32>
    %28 = arith.negf %27 : vector<8x32xf32>
    %29 = math.exp %28 : vector<8x32xf32>
    %cst_14 = arith.constant 1.000000e+00 : f32
    %30 = vector.broadcast %cst_14 : f32 to vector<8x32xf32>
    %31 = arith.addf %30, %29 : vector<8x32xf32>
    %32 = arith.divf %30, %31 : vector<8x32xf32>
    %c1 = arith.constant 1 : index
    %c0_15 = arith.constant 0 : index
    %c0_16 = arith.constant 0 : index
    %33 = vector.load %arg4[%c1, %c0_15, %c0_16] : memref<3x1x32xf32, #tpu.memory_space<vmem>>, vector<1x1x32xf32>
    %34 = vector.shape_cast %33 : vector<1x1x32xf32> to vector<1x32xf32>
    %35 = vector.broadcast %34 : vector<1x32xf32> to vector<8x32xf32>
    %36 = arith.addf %26, %35 : vector<8x32xf32>
    %37 = arith.mulf %0, %36 : vector<8x32xf32>
    %38 = arith.mulf %37, %32 : vector<8x32xf32>
    %39 = arith.addf %38, %16 : vector<8x32xf32>
    %c1_17 = arith.constant 1 : index
    %c0_18 = arith.constant 0 : index
    %c0_19 = arith.constant 0 : index
    %40 = vector.load %arg3[%c1_17, %c0_18, %c0_19] : memref<2x32x256xf32, #tpu.memory_space<vmem>>, vector<1x32x256xf32>
    %41 = vector.shape_cast %40 : vector<1x32x256xf32> to vector<32x256xf32>
    %cst_20 = arith.constant dense<0.000000e+00> : vector<8x256xf32>
    %42 = tpu.matmul %39, %41, %cst_20 {dimension_numbers = #tpu.dot_dimension_numbers<[1], [0], [0], [1], [0, 0, 1, 1], [], []>} : vector<8x32xf32>, vector<32x256xf32>, vector<8x256xf32> -> vector<8x256xf32>
    %43 = vector.extract_strided_slice %42 {offsets = [0, 0], sizes = [8, 32], strides = [1, 1]} : vector<8x256xf32> to vector<8x32xf32>
    %44 = vector.extract_strided_slice %42 {offsets = [0, 128], sizes = [8, 32], strides = [1, 1]} : vector<8x256xf32> to vector<8x32xf32>
    %45 = arith.negf %44 : vector<8x32xf32>
    %46 = math.exp %45 : vector<8x32xf32>
    %cst_21 = arith.constant 1.000000e+00 : f32
    %47 = vector.broadcast %cst_21 : f32 to vector<8x32xf32>
    %48 = arith.addf %47, %46 : vector<8x32xf32>
    %49 = arith.divf %47, %48 : vector<8x32xf32>
    %c2 = arith.constant 2 : index
    %c0_22 = arith.constant 0 : index
    %c0_23 = arith.constant 0 : index
    %50 = vector.load %arg4[%c2, %c0_22, %c0_23] : memref<3x1x32xf32, #tpu.memory_space<vmem>>, vector<1x1x32xf32>
    %51 = vector.shape_cast %50 : vector<1x1x32xf32> to vector<1x32xf32>
    %52 = vector.broadcast %51 : vector<1x32xf32> to vector<8x32xf32>
    %53 = arith.addf %43, %52 : vector<8x32xf32>
    %54 = arith.mulf %0, %53 : vector<8x32xf32>
    %55 = arith.mulf %54, %49 : vector<8x32xf32>
    %56 = arith.addf %55, %39 : vector<8x32xf32>
    %c0_24 = arith.constant 0 : index
    %c0_25 = arith.constant 0 : index
    %57 = vector.load %arg5[%c0_24, %c0_25] : memref<64x64xf32, #tpu.memory_space<vmem>>, vector<64x64xf32>
    %cst_26 = arith.constant dense<0.000000e+00> : vector<8x64xf32>
    %58 = tpu.matmul %22, %57, %cst_26 {dimension_numbers = #tpu.dot_dimension_numbers<[1], [0], [0], [1], [0, 0, 1, 1], [], []>} : vector<8x64xf32>, vector<64x64xf32>, vector<8x64xf32> -> vector<8x64xf32>
    %c0_27 = arith.constant 0 : index
    %c0_28 = arith.constant 0 : index
    %59 = vector.load %arg8[%c0_27, %c0_28] : memref<1x64xf32, #tpu.memory_space<vmem>>, vector<1x64xf32>
    %60 = vector.broadcast %59 : vector<1x64xf32> to vector<8x64xf32>
    %61 = arith.addf %58, %60 : vector<8x64xf32>
    %cst_29 = arith.constant 0.000000e+00 : f32
    %62 = vector.broadcast %cst_29 : f32 to vector<8x64xf32>
    %63 = arith.maximumf %61, %62 : vector<8x64xf32>
    %c0_30 = arith.constant 0 : index
    %c0_31 = arith.constant 0 : index
    %64 = vector.load %arg6[%c0_30, %c0_31] : memref<64x64xf32, #tpu.memory_space<vmem>>, vector<64x64xf32>
    %cst_32 = arith.constant dense<0.000000e+00> : vector<8x64xf32>
    %65 = tpu.matmul %63, %64, %cst_32 {dimension_numbers = #tpu.dot_dimension_numbers<[1], [0], [0], [1], [0, 0, 1, 1], [], []>} : vector<8x64xf32>, vector<64x64xf32>, vector<8x64xf32> -> vector<8x64xf32>
    %c0_33 = arith.constant 0 : index
    %c0_34 = arith.constant 0 : index
    %66 = vector.load %arg9[%c0_33, %c0_34] : memref<1x64xf32, #tpu.memory_space<vmem>>, vector<1x64xf32>
    %67 = vector.broadcast %66 : vector<1x64xf32> to vector<8x64xf32>
    %68 = arith.addf %65, %67 : vector<8x64xf32>
    %cst_35 = arith.constant 0.000000e+00 : f32
    %69 = vector.broadcast %cst_35 : f32 to vector<8x64xf32>
    %70 = arith.maximumf %68, %69 : vector<8x64xf32>
    %c0_36 = arith.constant 0 : index
    %c0_37 = arith.constant 0 : index
    %71 = vector.load %arg10[%c0_36, %c0_37] : memref<1x32xf32, #tpu.memory_space<vmem>>, vector<1x32xf32>
    %72 = vector.broadcast %71 : vector<1x32xf32> to vector<8x32xf32>
    %73 = arith.mulf %56, %72 : vector<8x32xf32>
    %cst_38 = arith.constant dense<0.000000e+00> : vector<8xf32>
    %74 = vector.multi_reduction <add>, %73, %cst_38 [1] : vector<8x32xf32> to vector<8xf32>
    %c0_39 = arith.constant 0 : index
    %c0_40 = arith.constant 0 : index
    %75 = vector.load %arg11[%c0_39, %c0_40] : memref<1x64xf32, #tpu.memory_space<vmem>>, vector<1x64xf32>
    %76 = vector.broadcast %75 : vector<1x64xf32> to vector<8x64xf32>
    %77 = arith.mulf %70, %76 : vector<8x64xf32>
    %cst_41 = arith.constant dense<0.000000e+00> : vector<8xf32>
    %78 = vector.multi_reduction <add>, %77, %cst_41 [1] : vector<8x64xf32> to vector<8xf32>
    %79 = arith.addf %74, %78 : vector<8xf32>
    %80 = vector.shape_cast %79 : vector<8xf32> to vector<1x8xf32>
    %c0_42 = arith.constant 0 : index
    %c0_43 = arith.constant 0 : index
    %81 = vector.load %arg12[%c0_42, %c0_43] : memref<1x1xf32, #tpu.memory_space<vmem>>, vector<1x1xf32>
    %82 = vector.broadcast %81 : vector<1x1xf32> to vector<1x8xf32>
    %83 = arith.addf %80, %82 : vector<1x8xf32>
    %c0_44 = arith.constant 0 : index
    %c0_45 = arith.constant 0 : index
    %84 = vector.load %arg13[%c0_44, %c0_45] : memref<1x8xf32, #tpu.memory_space<vmem>>, vector<1x8xf32>
    tpu.vector_store %arg13[%c0_44, %c0_45], %83 {strides = array<i32>} : memref<1x8xf32, #tpu.memory_space<vmem>>, vector<1x8xf32>,
    return
  }
  func.func @transform_0(%arg0: i32) -> (i32, i32) {
    %c0_i32 = arith.constant 0 : i32
    %c0_i32_0 = arith.constant 0 : i32
    return %arg0, %c0_i32 : i32, i32
  }
  func.func @transform_1(%arg0: i32) -> (i32, i32) {
    %c0_i32 = arith.constant 0 : i32
    %c0_i32_0 = arith.constant 0 : i32
    %c0_i32_1 = arith.constant 0 : i32
    return %c0_i32, %c0_i32_0 : i32, i32
  }
  func.func @transform_2(%arg0: i32) -> (i32, i32, i32) {
    %c0_i32 = arith.constant 0 : i32
    %c0_i32_0 = arith.constant 0 : i32
    %c0_i32_1 = arith.constant 0 : i32
    %c0_i32_2 = arith.constant 0 : i32
    return %c0_i32, %c0_i32_0, %c0_i32_1 : i32, i32, i32
  }
  func.func @transform_3(%arg0: i32) -> (i32, i32, i32) {
    %c0_i32 = arith.constant 0 : i32
    %c0_i32_0 = arith.constant 0 : i32
    %c0_i32_1 = arith.constant 0 : i32
    %c0_i32_2 = arith.constant 0 : i32
    return %c0_i32, %c0_i32_0, %c0_i32_1 : i32, i32, i32
  }
  func.func @transform_4(%arg0: i32) -> (i32, i32) {
    %c0_i32 = arith.constant 0 : i32
    %c0_i32_0 = arith.constant 0 : i32
    %c0_i32_1 = arith.constant 0 : i32
    return %c0_i32, %c0_i32_0 : i32, i32
  }
  func.func @transform_5(%arg0: i32) -> (i32, i32) {
    %c0_i32 = arith.constant 0 : i32
    %c0_i32_0 = arith.constant 0 : i32
    %c0_i32_1 = arith.constant 0 : i32
    return %c0_i32, %c0_i32_0 : i32, i32
  }
  func.func @transform_6(%arg0: i32) -> (i32, i32) {
    %c0_i32 = arith.constant 0 : i32
    %c0_i32_0 = arith.constant 0 : i32
    %c0_i32_1 = arith.constant 0 : i32
    return %c0_i32, %c0_i32_0 : i32, i32
  }
  func.func @transform_7(%arg0: i32) -> (i32, i32) {
    %c0_i32 = arith.constant 0 : i32
    %c0_i32_0 = arith.constant 0 : i32
    %c0_i32_1 = arith.constant 0 : i32
    return %c0_i32, %c0_i32_0 : i32, i32
  }
  func.func @transform_8(%arg0: i32) -> (i32, i32) {
    %c0_i32 = arith.constant 0 : i32
    %c0_i32_0 = arith.constant 0 : i32
    %c0_i32_1 = arith.constant 0 : i32
    return %c0_i32, %c0_i32_0 : i32, i32
  }
  func.func @transform_9(%arg0: i32) -> (i32, i32) {
    %c0_i32 = arith.constant 0 : i32
    %c0_i32_0 = arith.constant 0 : i32
    %c0_i32_1 = arith.constant 0 : i32
    return %c0_i32, %c0_i32_0 : i32, i32
  }
  func.func @transform_10(%arg0: i32) -> (i32, i32) {
    %c0_i32 = arith.constant 0 : i32
    %c0_i32_0 = arith.constant 0 : i32
    %c0_i32_1 = arith.constant 0 : i32
    return %c0_i32, %c0_i32_0 : i32, i32
  }
  func.func @transform_11(%arg0: i32) -> (i32, i32) {
    %c0_i32 = arith.constant 0 : i32
    %c0_i32_0 = arith.constant 0 : i32
    %c0_i32_1 = arith.constant 0 : i32
    return %c0_i32, %c0_i32_0 : i32, i32
  }
  func.func @transform_12(%arg0: i32) -> (i32, i32) {
    %c0_i32 = arith.constant 0 : i32
    %c0_i32_0 = arith.constant 0 : i32
    return %c0_i32, %arg0 : i32, i32
  }
}

</mosaic_0001>

<bundles_post_ra>
// kernel: tpu_custom_call.1
= control target key start
LH: loop header
LB: loop body
LE: loop exit
PB: predicated region body
PF: predicated region fallthrough
CT: control target
= control target key end

     0   :  { %s862_s0 = inlined_call_operand.hbm [shape: f32[8,32], index: 0, kind: input, shape index: {}]   ;;  %s863_s1 = inlined_call_operand.hbm [shape: f32[32,320], index: 1, kind: input, shape index: {}]   ;;  %s864_s2 = inlined_call_operand.hbm [shape: f32[2,32,256], index: 2, kind: input, shape index: {}]   ;;  %s865_s3 = inlined_call_operand.vmem [shape: f32[3,1,32], index: 3, kind: input, shape index: {}]   ;;  %s866_s4 = inlined_call_operand.hbm [shape: f32[64,64], index: 4, kind: input, shape index: {}]   ;;  %s867_s5 = inlined_call_operand.hbm [shape: f32[64,64], index: 5, kind: input, shape index: {}]   ;;  %s868_s6 = inlined_call_operand.vmem [shape: f32[1,64], index: 6, kind: input, shape index: {}]   ;;  %s869_s7 = inlined_call_operand.vmem [shape: f32[1,64], index: 7, kind: input, shape index: {}]   ;;  %s870_s8 = inlined_call_operand.vmem [shape: f32[1,64], index: 8, kind: input, shape index: {}]   ;;  %s871_s9 = inlined_call_operand.vmem [shape: f32[1,32], index: 9, kind: input, shape index: {}]   ;;  %s872_s10 = inlined_call_operand.vmem [shape: f32[1,64], index: 10, kind: input, shape index: {}]   ;;  %s873_s11 = inlined_call_operand.<no memory space> [shape: f32[1,1], index: 11, kind: input, shape index: {}]   ;;  %s874_s12 = inlined_call_operand.hbm [shape: f32[1,8], index: 12, kind: output, shape index: {}]  }
   0x1   :  { %v17_v0 = vstv %s873_s11 }
   0x2   :  { %18 = vst [vmem:[#allocation2] sm:$0x1] %v17_v0 }
   0x3   :  { %19 = vsyncpa [#allocation4], 0 }
   0x4   :  { %20 = vsyncpa [#allocation7], 0 }
   0x5   :  { %21 = vsyncpa [#allocation10], 0  ;;  %s38_s25 = sshll.u32 %s863_s1, 4  ;;  %s39_s25 = int_to_ptr.hbm [resolvable:$true] %s38_s25 }
   0x6   :  { %22 = vsyncpa [#allocation5], 0  ;;  %s714_s26 = smov [#allocation6]   ;;  %s66_s30 = sshll.u32 %s866_s4, 4  ;;  %s67_s30 = int_to_ptr.hbm [resolvable:$true] %s66_s30 }
   0x7   :  { %s40_s27 = sshll.u32 %s714_s26, 4  ;;  %s715_s13 = smov 384   ;;  %s41_s27 = int_to_ptr.vmem [resolvable:$true] %s40_s27 }
   0x8   :  { %s716_s14 = smov 24   ;;  %s717_s11 = smov [#allocation9]  }
   0x9   :  { %46 = dma.hbm_to_vmem [thread:$0]  %s39_s25, 1536, %s41_s27, [#allocation7], %s715_s13, %s715_s13, %s716_s14  }
   0xa   :  { %s68_s15 = sshll.u32 %s717_s11, 4  ;;  %s718_s16 = smov 128   ;;  %s69_s15 = int_to_ptr.vmem [resolvable:$true] %s68_s15 }
   0xb   :  { %s719_s17 = smov 8   ;;  %s28_s19 = sshll.u32 %s862_s0, 4  ;;  %s29_s19 = int_to_ptr.hbm [resolvable:$true] %s28_s19 }
   0xc   :  { %74 = dma.hbm_to_vmem [thread:$0]  %s67_s30, 1024, %s69_s15, [#allocation10], %s718_s16, %s718_s16, %s719_s17  }
   0xd   :  { %s720_s20 = smov [#allocation3]   ;;  %s51_s23 = sshll.u32 %s864_s2, 4  ;;  %s52_s23 = int_to_ptr.hbm [resolvable:$true] %s51_s23 }
   0xe   :  { %s30_s21 = sshll.u32 %s720_s20, 4  ;;  %s721_s24 = smov [#allocation8]   ;;  %s31_s21 = int_to_ptr.vmem [resolvable:$true] %s30_s21 }
   0xf   :  { %33 = dma.hbm_to_vmem [thread:$0]  %s29_s19, 128, %s31_s21, [#allocation4]  }
  0x10   :  { %s53_s25 = sshll.u32 %s721_s24, 4  ;;  %s722_s26 = smov 256   ;;  %s54_s25 = int_to_ptr.vmem [resolvable:$true] %s53_s25 }
  0x11   :  { %s723_s27 = smov 16   ;;  %s79_s0 = sshll.u32 %s867_s5, 4  ;;  %s80_s0 = int_to_ptr.hbm [resolvable:$true] %s79_s0 }
  0x12   :  { %59 = dma.hbm_to_vmem [thread:$0]  %s52_s23, 2048, %s54_s25, [#allocation7], %s722_s26, %s722_s26, %s723_s27  }
  0x13   :  { %s724_s30 = smov [#allocation11]  }
  0x14   :  { %s81_s13 = sshll.u32 %s724_s30, 4  ;;  %s82_s13 = int_to_ptr.vmem [resolvable:$true] %s81_s13 }
  0x15   :  { %87 = dma.hbm_to_vmem [thread:$0]  %s80_s0, 1024, %s82_s13, [#allocation10], %s718_s16, %s718_s16, %s719_s17  }
  0x16   :  { %706 = dma.done.wait [#allocation4], 128  }
  0x17   :  { %707 = vsyncadd [#allocation4], 4294967168 }
  0x18   :  { %708 = dma.done.wait [#allocation7], 3584  }
  0x19   :  { %709 = vsyncadd [#allocation7], 4294963712 }
  0x1a   :  { %710 = dma.done.wait [#allocation10], 2048  }
  0x1b   :  { %711 = vsyncadd [#allocation10], 4294965248  ;;  %v130_v1 = vld [vmem:[#allocation6 + $0x48] sm:$0xff]  ;;  %v127_v2 = vld [vmem:[#allocation6 + $0x30] sm:$0xff]  ;;  %vm133_vm0 = vcmask 261120   ;;  %vm401_vm5 = vcmask 523264  }
  0x1c   :  { %149 = vmatpush.msra.mxu1 %v130_v1  ;;  %v124_v3 = vld [vmem:[#allocation6 + $0x18] sm:$0xff]  ;;  %v121_v4 = vld [vmem:[#allocation6] sm:$0xff]  ;;  %v131_v8 = vld [vmem:[#allocation6 + $0x50] sm:$0xff]  ;;  %vm492_vm14 = vcmask 57344  }
  0x1d   :  { %v810_v5 = vld [vmem:[#allocation3] sm:$0xff]  ;;  %v129_v7 = vld [vmem:[#allocation6 + $0x40] sm:$0xff]  ;;  %v126_v9 = vld [vmem:[#allocation6 + $0x28] sm:$0xff] }
  0x1e   :  { %150 = vmatpush.msra.mxu1 %v127_v2  ;;  %v132_v6 = vld [vmem:[#allocation6 + $0x58] sm:$0xff]  ;;  %v123_v10 = vld [vmem:[#allocation6 + $0x10] sm:$0xff]  ;;  %v125_v12 = vld [vmem:[#allocation6 + $0x20] sm:$0xff] }
  0x1f   :  { %189 = vmatpush.msra.mxu2 %v132_v6  ;;  %v128_v11 = vld [vmem:[#allocation6 + $0x38] sm:$0xff]  ;;  %v122_v13 = vld [vmem:[#allocation6 + $0x8] sm:$0xff]  ;;  %v236_v14 = vld [vmem:[#allocation8 + $0x30] sm:$0xff] }
  0x20   :  { %151 = vmatpush.msra.mxu1 %v124_v3  ;;  %v237_v15 = vld [vmem:[#allocation8 + $0x38] sm:$0xff]  ;;  %v234_v16 = vld [vmem:[#allocation8 + $0x20] sm:$0xff]  ;;  %253 = vmatpush.msra.mxu3 %v236_v14  ;;  %v235_v17 = vld [vmem:[#allocation8 + $0x28] sm:$0xff] }
  0x21   :  { %190 = vmatpush.msra.mxu2 %v129_v7  ;;  %273 = vmatpush.msra.mxu0 %v237_v15  ;;  %v232_v18 = vld [vmem:[#allocation8 + $0x10] sm:$0xff]  ;;  %v233_v19 = vld [vmem:[#allocation8 + $0x18] sm:$0xff]  ;;  %v230_v21 = vld [vmem:[#allocation8] sm:$0xff] }
  0x22   :  { %152 = vmatpush.msra.mxu1 %v121_v4  ;;  %254 = vmatpush.msra.mxu3 %v234_v16  ;;  %v231_v22 = vld [vmem:[#allocation8 + $0x8] sm:$0xff]  ;;  %v396_v25 = vld [vmem:[#allocation9 + $0x38] sm:$0xff]  ;;  %v395_v26 = vld [vmem:[#allocation9 + $0x30] sm:$0xff] }
  0x23   :  { %513 = vmatmul.msk.f32.vlgmr.msra.gmra.mxu1 %vm133_vm0, %v810_v5  ;;  %191 = vmatpush.msra.mxu2 %v126_v9  ;;  %v394_v27 = vld [vmem:[#allocation9 + $0x28] sm:$0xff]  ;;  %v393_v28 = vld [vmem:[#allocation9 + $0x20] sm:$0xff]  ;;  %v392_v29 = vld [vmem:[#allocation9 + $0x18] sm:$0xff] }
  0x24   :  { %169 = vmatpush.msrb.mxu1 %v131_v8  ;;  %274 = vmatpush.msra.mxu0 %v235_v17  ;;  %v391_v31 = vld [vmem:[#allocation9 + $0x10] sm:$0xff]  ;;  %v390_v33 = vld [vmem:[#allocation9 + $0x8] sm:$0xff]  ;;  %v389_v34 = vld [vmem:[#allocation9] sm:$0xff] }
  0x25   :  { %192 = vmatpush.msra.mxu2 %v123_v10  ;;  %255 = vmatpush.msra.mxu3 %v232_v18  ;;  %v542_v36 = vld [vmem:[%s865_s3] ss:$0 sm:$0xff]  ;;  %v317_v54 = vld [vmem:[#allocation8 + $0x78] sm:$0xff]  ;;  %v315_v56 = vld [vmem:[#allocation8 + $0x68] sm:$0xff] }
  0x26   :  { %170 = vmatpush.msrb.mxu1 %v128_v11  ;;  %515 = vmatmul.msk.f32.vlgmr.msra.gmra.mxu2 %vm133_vm0, %v810_v5  ;;  %v543_v49 = vld [vmem:[%s868_s6] ss:$0 sm:$0xff]  ;;  %v314_v57 = vld [vmem:[#allocation8 + $0x60] sm:$0xff]  ;;  %v313_v58 = vld [vmem:[#allocation8 + $0x58] sm:$0xff] }
  0x27   :  { %275 = vmatpush.msra.mxu0 %v233_v19  ;;  %256 = vmatpush.msra.mxu3 %v230_v21  ;;  %v316_v55 = vld [vmem:[#allocation8 + $0x70] sm:$0xff]  ;;  %v311_v60 = vld [vmem:[#allocation8 + $0x48] sm:$0xff]  ;;  %v310_v61 = vld [vmem:[#allocation8 + $0x40] sm:$0xff] }
  0x28   :  { %171 = vmatpush.msrb.mxu1 %v125_v12  ;;  %353 = vmatpush.msrb.mxu2 %v317_v54  ;;  %v312_v59 = vld [vmem:[#allocation8 + $0x50] sm:$0xff]  ;;  %v433_v0 = vld [vmem:[#allocation11 + $0x38] sm:$0xff]  ;;  %v431_v2 = vld [vmem:[#allocation11 + $0x28] sm:$0xff] }
  0x29   :  { %276 = vmatpush.msra.mxu0 %v231_v22  ;;  %413 = vmatpush.msrb.mxu3 %v396_v25  ;;  %v432_v1 = vld [vmem:[#allocation11 + $0x30] sm:$0xff]  ;;  %v430_v3 = vld [vmem:[#allocation11 + $0x20] sm:$0xff]  ;;  %v429_v6 = vld [vmem:[#allocation11 + $0x18] sm:$0xff] }
  0x2a   :  { %172 = vmatpush.msrb.mxu1 %v122_v13  ;;  %354 = vmatpush.msrb.mxu2 %v315_v56  ;;  %v428_v8 = vld [vmem:[#allocation11 + $0x10] sm:$0xff]  ;;  %v427_v11 = vld [vmem:[#allocation11 + $0x8] sm:$0xff]  ;;  %v426_v12 = vld [vmem:[#allocation11] sm:$0xff] }
  0x2b   :  { %514 = vmatmul.msk.f32.vlgmr.msrb.gmra.mxu1 %vm133_vm0, %v810_v5  ;;  %414 = vmatpush.msrb.mxu3 %v395_v26  ;;  %v545_v10 = vld [vmem:[%s869_s7] ss:$0 sm:$0xff]  ;;  %v544_v18 = vld [vmem:[%s865_s3 + $0x1] ss:$0 sm:$0xff] }
  0x2c   :  { %333 = vmatpush.msra.mxu1 %v316_v55  ;;  %355 = vmatpush.msrb.mxu2 %v313_v58  ;;  %v548_v55 = vld [vmem:[%s871_s9] ss:$0 sm:$0xff]  ;;  %s726_s9 = smov [#allocation12]  }
  0x2d   :  { %415 = vmatpush.msrb.mxu3 %v394_v27  ;;  %449 = vmatpush.msrb.mxu0 %v433_v0  ;;  %v488_v0 = vlaneseq  ;;  %s499_s22 = sshll.u32 %s726_s9, 4  ;;  %s500_s22 = int_to_ptr.vmem [resolvable:$true] %s499_s22 }
  0x2e   :  { %334 = vmatpush.msra.mxu1 %v314_v57  ;;  %356 = vmatpush.msrb.mxu2 %v311_v60 }
  0x2f   :  { %416 = vmatpush.msrb.mxu3 %v393_v28  ;;  %450 = vmatpush.msrb.mxu0 %v432_v1 }
  0x30   :  { %335 = vmatpush.msra.mxu1 %v312_v59  ;;  %v549_v59 = vld [vmem:[%s872_s10] ss:$0 sm:$0xff]  ;;  %s501_s10 = sshll.u32 %s874_s12, 4  ;;  %s502_s10 = int_to_ptr.hbm [resolvable:$true] %s501_s10 }
  0x31   :  { %417 = vmatpush.msrb.mxu3 %v392_v29  ;;  %451 = vmatpush.msrb.mxu0 %v431_v2 }
  0x32   :  { %336 = vmatpush.msra.mxu1 %v310_v61 }
  0x33   :  { %418 = vmatpush.msrb.mxu3 %v391_v31  ;;  %452 = vmatpush.msrb.mxu0 %v430_v3  ;;  %v489_v3 = vand.u32 127, %v488_v0 }
  0x35   :  { %419 = vmatpush.msrb.mxu3 %v390_v33  ;;  %453 = vmatpush.msrb.mxu0 %v429_v6  ;;  %v725_v33 = vmov 0  }
  0x36   :  { %540 = vset.pattern.permute.xlu1 %v725_v33  ;;  %541 = vset.pattern.permute.xlu0 %v725_v33 }
  0x37   :  { %420 = vmatpush.msrb.mxu3 %v389_v34  ;;  %454 = vmatpush.msrb.mxu0 %v428_v8 }
  0x39   :  { %455 = vmatpush.msrb.mxu0 %v427_v11 }
  0x3b   :  { %456 = vmatpush.msrb.mxu0 %v426_v12 }
  0xa0   :  { %v154_v20 = vpop.f32.mrf.mxu1 }
  0xa1   :  { %v220_v40 = vadd.f32 %v542_v36, %v154_v20  ;;  %v479_v36 = vld [vmem:[#allocation2] sm:$0x1] }
  0xa2   :  { %482 = vperm.xlu1 %540, %v479_v36  }
  0xa3   :  { %v221_v45 = vmul.f32 %v220_v40, %v810_v5 }
  0xa8   :  { %v174_v23 = vpop.f32.mrf.mxu1 }
  0xa9   :  { %v516_v24 = vmul.f32 -1.442695, %v174_v23  ;;  %v194_v50 = vpop.f32.mrf.mxu2 }
  0xaa   :  { %v228_v52 = vadd.f32 %v543_v49, %v194_v50 }
  0xab   :  { %550 = vpow2.f32 %v516_v24 }
  0xac   :  { %v229_v53 = vmax.f32 %v228_v52, 0.0 }
  0xb1   :  { %v551_v30 = vpop.eup %550 }
  0xb2   :  { %v200_v32 = vadd.f32 1.0, %v551_v30 }
  0xb4   :  { %552 = vrcp.f32 %v200_v32  ;;  %v212_v39 = vand.u32 2147483648, %v200_v32  ;;  %v210_v42 = vand.u32 2147483647, %v200_v32  ;;  %vm206_vm2 = vweird.f32 %v200_v32 }
  0xb6   :  { %v213_v44 = vor.u32 1.1754944e-38, %v212_v39  ;;  %vm211_vm4 = vcmp.eq.f32.partialorder %v210_v42, 8.507059e+37 }
  0xba   :  { %v553_v35 = vpop.eup %552 }
  0xbb   :  { %v202_v37 = vmul.f32 %v553_v35, %v200_v32  ;;  %vm207_vm1 = vweird.f32 %v553_v35 }
  0xbc   :  { %vm208_vm3 = vmor %vm206_vm2, %vm207_vm1 }
  0xbd   :  { %v203_v38 = vsub.f32 1.0, %v202_v37 }
  0xbf   :  { %v204_v41 = vmul.f32 %v553_v35, %v203_v38  ;;  %v546_v38 = vld [vmem:[%s865_s3 + $0x2] ss:$0 sm:$0xff] }
  0xc1   :  { %v205_v43 = vadd.f32 %v553_v35, %v204_v41 }
  0xc3   :  { %v209_v46 = vsel %vm208_vm3, %v553_v35, %v205_v43 }
  0xc4   :  { %v214_v47 = vsel %vm211_vm4, %v213_v44, %v209_v46  ;;  %v547_v46 = vld [vmem:[%s870_s8] ss:$0 sm:$0xff] }
  0xc5   :  { %v222_v48 = vmul.f32 %v221_v45, %v214_v47 }
  0xc7   :  { %v826_v51 = vadd.f32 %v222_v48, %v810_v5 }
  0xc9   :  { %517 = vmatmul.msk.f32.vlgmr.msra.gmra.mxu3 %vm133_vm0, %v826_v51  ;;  %518 = vmatmul.msk.f32.vlgmr.msra.gmra.mxu0 %vm133_vm0, %v826_v51 }
  0xd1   :  { %525 = vmatmul.msk.f32.vlgmr.msrb.gmra.mxu3 %vm401_vm5, %v229_v53 }
 0x146   :  { %v278_v62 = vpop.f32.mrf.mxu0 }
 0x147   :  { %v519_v63 = vmul.f32 -1.442695, %v278_v62 }
 0x149   :  { %554 = vpow2.f32 %v519_v63  ;;  %v483_v63 = vpop.permute.xlu1 %482 }
 0x14a   :  { %v485_v1 = vperm.slane %v483_v63, 0 }
 0x14c   :  { %v258_v4 = vpop.f32.mrf.mxu3 }
 0x14d   :  { %v305_v23 = vadd.f32 %v544_v18, %v258_v4 }
 0x14f   :  { %v555_v7 = vpop.eup %554  ;;  %v306_v27 = vmul.f32 %v305_v23, %v810_v5 }
 0x150   :  { %v284_v9 = vadd.f32 1.0, %v555_v7 }
 0x152   :  { %556 = vrcp.f32 %v284_v9  ;;  %v296_v20 = vand.u32 2147483648, %v284_v9  ;;  %v294_v22 = vand.u32 2147483647, %v284_v9  ;;  %vm290_vm7 = vweird.f32 %v284_v9 }
 0x154   :  { %v422_v13 = vpop.f32.mrf.mxu3  ;;  %v297_v25 = vor.u32 1.1754944e-38, %v296_v20  ;;  %vm295_vm9 = vcmp.eq.f32.partialorder %v294_v22, 8.507059e+37 }
 0x155   :  { %v423_v14 = vadd.f32 %v545_v10, %v422_v13 }
 0x157   :  { %v425_v15 = vmax.f32 %v423_v14, 0.0 }
 0x158   :  { %v557_v16 = vpop.eup %556 }
 0x159   :  { %v286_v17 = vmul.f32 %v557_v16, %v284_v9  ;;  %526 = vmatmul.msk.f32.vlgmr.msrb.gmra.mxu0 %vm401_vm5, %v425_v15  ;;  %vm291_vm6 = vweird.f32 %v557_v16 }
 0x15a   :  { %vm292_vm8 = vmor %vm290_vm7, %vm291_vm6 }
 0x15b   :  { %v287_v19 = vsub.f32 1.0, %v286_v17 }
 0x15d   :  { %v288_v21 = vmul.f32 %v557_v16, %v287_v19 }
 0x15f   :  { %v289_v24 = vadd.f32 %v557_v16, %v288_v21 }
 0x161   :  { %v293_v26 = vsel %vm292_vm8, %v557_v16, %v289_v24 }
 0x162   :  { %v298_v28 = vsel %vm295_vm9, %v297_v25, %v293_v26 }
 0x163   :  { %v307_v29 = vmul.f32 %v306_v27, %v298_v28 }
 0x165   :  { %v308_v30 = vadd.f32 %v307_v29, %v826_v51 }
 0x167   :  { %521 = vmatmul.msk.f32.vlgmr.msra.gmra.mxu1 %vm133_vm0, %v308_v30  ;;  %522 = vmatmul.msk.f32.vlgmr.msrb.gmra.mxu2 %vm133_vm0, %v308_v30 }
 0x1d6   :  { %v458_v48 = vpop.f32.mrf.mxu0 }
 0x1d7   :  { %v459_v53 = vadd.f32 %v547_v46, %v458_v48 }
 0x1d9   :  { %v461_v57 = vmax.f32 %v459_v53, 0.0 }
 0x1e4   :  { %v338_v40 = vpop.f32.mrf.mxu1 }
 0x1e5   :  { %v385_v43 = vadd.f32 %v546_v38, %v338_v40 }
 0x1e7   :  { %v386_v50 = vmul.f32 %v385_v43, %v810_v5  ;;  %v474_v5 = vmul.f32 %v549_v59, %v461_v57 }
 0x1e9   :  { %v475_v61 = vsel %vm401_vm5, %v474_v5, 0.0 }
 0x1ea   :  { %v358_v31 = vpop.f32.mrf.mxu2 }
 0x1eb   :  { %v523_v32 = vmul.f32 -1.442695, %v358_v31 }
 0x1ed   :  { %558 = vpow2.f32 %v523_v32 }
 0x1f3   :  { %v559_v34 = vpop.eup %558 }
 0x1f4   :  { %v364_v35 = vadd.f32 1.0, %v559_v34 }
 0x1f6   :  { %560 = vrcp.f32 %v364_v35  ;;  %v376_v42 = vand.u32 2147483648, %v364_v35  ;;  %v374_v45 = vand.u32 2147483647, %v364_v35  ;;  %vm370_vm11 = vweird.f32 %v364_v35 }
 0x1f8   :  { %v377_v49 = vor.u32 1.1754944e-38, %v376_v42  ;;  %vm375_vm13 = vcmp.eq.f32.partialorder %v374_v45, 8.507059e+37 }
 0x1fc   :  { %v561_v37 = vpop.eup %560 }
 0x1fd   :  { %v366_v39 = vmul.f32 %v561_v37, %v364_v35  ;;  %vm371_vm10 = vweird.f32 %v561_v37 }
 0x1fe   :  { %vm372_vm12 = vmor %vm370_vm11, %vm371_vm10 }
 0x1ff   :  { %v367_v41 = vsub.f32 1.0, %v366_v39 }
 0x201   :  { %v368_v44 = vmul.f32 %v561_v37, %v367_v41 }
 0x203   :  { %v369_v47 = vadd.f32 %v561_v37, %v368_v44 }
 0x205   :  { %v373_v51 = vsel %vm372_vm12, %v561_v37, %v369_v47 }
 0x206   :  { %v378_v52 = vsel %vm375_vm13, %v377_v49, %v373_v51 }
 0x207   :  { %v387_v54 = vmul.f32 %v386_v50, %v378_v52 }
 0x209   :  { %v388_v56 = vadd.f32 %v387_v54, %v308_v30 }
 0x20b   :  { %v466_v58 = vmul.f32 %v548_v55, %v388_v56 }
 0x20d   :  { %v467_v60 = vsel %vm133_vm0, %v466_v58, 0.0 }
 0x20e   :  { %468 = vadd.xlane.f32.xlu0 %v467_v60 }
 0x216   :  { %476 = vadd.xlane.f32.xlu0 %v475_v61 }
 0x281   :  { %v469_v62 = vpop.xlane.xlu0 %468 }
 0x289   :  { %v477_v2 = vpop.xlane.xlu0 %476 }
 0x28a   :  { %v478_v4 = vadd.f32 %v477_v2, %v469_v62 }
 0x28c   :  { %v486_v6 = vadd.f32 %v485_v1, %v478_v4 }
 0x28e   :  { %v490_v7 = vperm.slane %v486_v6, %v489_v3 }
 0x290   :  { %493 = vst.msk [vmem:[#allocation12] sm:$0x1] %vm492_vm14, %v490_v7 }
 0x291   :  { %504 = dma.vmem_to_hbm [thread:$0]  %s500_s22, 16, %s502_s10, [#allocation5]  }
 0x292   :  { %712 = dma.done.wait [#allocation5], 16  }
 0x293   :  { %713 = vsyncadd [#allocation5], 4294967280 }
 0x294   :  { %509 = vsyncpa [#allocation4], 1 }
 0x295   :  { %510 = vsyncpa [#allocation7], 1 }
 0x296   :  { %511 = vsyncpa [#allocation10], 1 }
 0x297   :  { %512 = vsyncpa [#allocation5], 1 }

</bundles_post_ra>
